<compile_context>
chip_gen: v7x
topology: tpu7x:2x2x1
jax: 0.10.0
libtpu: 0.0.40
codegen_flags: <defaults>
</compile_context>

<pallas_src>
import functools

import jax
import jax.numpy as jnp
from jax.experimental import pallas as pl
from jax.experimental.pallas import tpu as pltpu


def _cdiv(a, b):
    return -(-a // b)


def _device_kind():
    try:
        return jax.devices()[0].device_kind.lower()
    except Exception:
        return ""


def _is_v7x():
    kind = _device_kind()
    return ("v7" in kind) or ("7x" in kind)


def recommended_compute_dtype():
    """bf16 activations on v6e/v7x (bf16-native VPU/EUP, half the DMA bytes and
    vreg pressure); f32 on v5e/older where bf16 only adds convert ops."""
    kind = _device_kind()
    if ("v6" in kind) or ("v7" in kind) or ("7x" in kind) or ("trillium" in kind):
        return jnp.bfloat16
    return jnp.float32


# Only split a single-step grid across v7x's two TensorCores when each core
# gets at least this many batch columns (per-step work >~1us); otherwise the
# ~0.35us per-step overhead dominates and one big tile wins.
_V7X_MIN_COLS_PER_CORE = 4096


def _plan_batch_tiling(batch, width, compute_dtype, block_b):
    """Lane-dense batch tiling.

    * Round the batch up to the 128-lane width first, then split into equal
      128-multiple tiles -> pad waste is <128 columns plus at most 128 per
      extra step (instead of up to bb-1).
    * Cap the tile by vreg pressure, not VMEM: the live (width, bb) activation
      must stay in ~half the 64-entry vreg file (width*bb*itemsize <= 128 KiB)
      so the matmul->bias->tanh chain never spills.
    * Split into multiple steps only when forced by that cap, or on v7x (2 TCs)
      when each core gets >= _V7X_MIN_COLS_PER_CORE columns.  On single-TC
      v5e/v6e small batches run in a single grid step.
    """
    groups = _cdiv(max(int(batch), 1), 128)                 # 128-lane groups
    itemsize = jnp.dtype(compute_dtype).itemsize
    cap_groups = max(1, (128 * 1024) // (max(int(width), 1) * itemsize * 128))
    cap_groups = min(cap_groups, max(1, int(block_b) // 128))
    n_steps = _cdiv(groups, cap_groups)
    if n_steps == 1 and groups * 128 >= 2 * _V7X_MIN_COLS_PER_CORE and _is_v7x():
        n_steps = 2
    bb = _cdiv(groups, n_steps) * 128
    return bb, n_steps, n_steps * bb


def _mlp_residual_kernel(*refs, n_linear, in_dim, compute_dtype):
    """Fused MLP + residual add on one batch tile.

    refs = (xin, w0, b0, w1, b1, ..., out).
    xin is the feature-major concatenation [x; x_0] of shape (in+out, bb):
    batch on the lane axis, so activations are lane-dense and the output store
    is an unmasked vst.  Matmuls accumulate in f32; bias/residual/store are f32;
    activations between layers use `compute_dtype` (f32 or bf16).
    """
    xin_ref = refs[0]
    o_ref = refs[-1]
    wb = refs[1:-1]

    xin = xin_ref[...]                                   # (in_dim + out_dim, bb)
    h = xin[:in_dim, :]                                  # (in_dim, bb) compute_dtype
    x0 = xin[in_dim:, :].astype(jnp.float32)             # (out_dim, bb) residual, f32

    for layer in range(n_linear):
        w = wb[2 * layer][...]                           # (out_f, in_f) compute_dtype
        b = wb[2 * layer + 1][...].astype(jnp.float32)   # (out_f, 1)    f32
        # W @ h on transposed tiles == x @ W^T in the reference; f32 accumulate.
        acc = jnp.dot(w, h, preferred_element_type=jnp.float32) + b
        if layer < n_linear - 1:
            # Tanh between layers; bf16 tanh is EUP-native on v6e/v7x.
            h = jnp.tanh(acc.astype(compute_dtype))
        else:
            h = acc                                      # last layer stays f32

    o_ref[...] = (h + x0).astype(o_ref.dtype)


@functools.partial(jax.jit,
                   static_argnames=("compute_dtype", "out_dtype", "block_b"))
def global_position_transform_forward_feature_major(
        xin_t, weights, biases, *,
        compute_dtype=jnp.float32, out_dtype=jnp.float32, block_b=4096):
    """Zero-layout-overhead entry point.

    xin_t:   (input_dim + output_dim, B) feature-major concatenation [x^T; x0^T]
    weights: list of (out_features, in_features) arrays (PyTorch nn.Linear layout)
    biases:  list of (out_features,) or (out_features, 1) arrays
    returns: y^T of shape (output_dim, B)

    Callers that keep activations feature-major avoid every wrapper-side
    transpose/pad HBM pass.
    """
    feat, batch = xin_t.shape
    n_linear = len(weights)
    out_dim = int(weights[-1].shape[0])
    in_dim = feat - out_dim
    assert in_dim == int(weights[0].shape[1]), "xin_t width != input_dim + output_dim"

    cdt = jnp.dtype(compute_dtype)
    width = max(max(int(w.shape[0]) for w in weights), feat)
    bb, n_steps, b_pad = _plan_batch_tiling(batch, width, cdt, block_b)

    xin_t = xin_t.astype(cdt)
    if b_pad != batch:
        xin_t = jnp.pad(xin_t, ((0, 0), (0, b_pad - batch)))

    in_specs = [pl.BlockSpec((feat, bb), lambda i: (0, i))]
    params = []
    for w, b in zip(weights, biases):
        w = jnp.asarray(w, cdt)                              # (out_f, in_f)
        b = jnp.asarray(b, jnp.float32).reshape(-1, 1)       # (out_f, 1), f32 bias add
        in_specs.append(pl.BlockSpec(w.shape, lambda i: (0, 0)))
        in_specs.append(pl.BlockSpec(b.shape, lambda i: (0, 0)))
        params.extend([w, b])

    kernel = functools.partial(_mlp_residual_kernel,
                               n_linear=n_linear, in_dim=in_dim,
                               compute_dtype=cdt)

    yt = pl.pallas_call(
        kernel,
        out_shape=jax.ShapeDtypeStruct((out_dim, b_pad), out_dtype),
        grid_spec=pltpu.PrefetchScalarGridSpec(
            num_scalar_prefetch=0,
            grid=(n_steps,),
            in_specs=in_specs,
            out_specs=pl.BlockSpec((out_dim, bb), lambda i: (0, i)),
        ),
        compiler_params=pltpu.CompilerParams(
            dimension_semantics=("parallel",),
            # Let XLA fuse the concat/transpose/pad producer into operand 0
            # instead of materializing it as a separate HBM pass.
            allow_input_fusion=[True] + [False] * (2 * n_linear),
        ),
    )(xin_t, *params)

    if b_pad != batch:
        yt = yt[:, :batch]
    return yt


@functools.partial(jax.jit, static_argnames=("compute_dtype", "block_b"))
def global_position_transform_forward(x, x0, weights, biases, *,
                                      compute_dtype=jnp.float32, block_b=4096):
    """y = MLP(x) + x0 (module layout).

    x:  (B, input_dim)   x0: (B, output_dim)   returns (B, output_dim).
    Single fused layout op in (concat+transpose) and a tiny slice+transpose out;
    pass compute_dtype=jnp.bfloat16 on v6e/v7x (see recommended_compute_dtype).
    """
    B, in_dim = x.shape
    out_dim = x0.shape[-1]
    assert x0.shape == (B, out_dim)
    xin_t = jnp.concatenate((x, x0), axis=1).T           # one fused layout op
    yt = global_position_transform_forward_feature_major(
        xin_t, weights, biases,
        compute_dtype=compute_dtype, out_dtype=x.dtype, block_b=block_b)
    return yt.T


def init_mlp_params(key, input_dim, hidden_dim, output_dim, num_layers):
    """Deterministic parameter init matching the PyTorch module's shapes.

    Weights are (out_features, in_features) (PyTorch-native); biases (out, 1).
    """
    dims = [input_dim] + [hidden_dim] * num_layers + [output_dim]
    weights, biases = [], []
    for i in range(len(dims) - 1):
        key, kw, kb = jax.random.split(key, 3)
        bound = 1.0 / jnp.sqrt(dims[i])
        w = jax.random.uniform(kw, (dims[i + 1], dims[i]), jnp.float32,
                               -bound, bound)
        b = jax.random.uniform(kb, (dims[i + 1], 1), jnp.float32,
                               -bound, bound)
        weights.append(w)
        biases.append(b)
    return weights, biases


def reference_forward(x, x0, weights, biases):
    h = x
    for i, (w, b) in enumerate(zip(weights, biases)):
        h = h @ w.T + b.T
        if i < len(weights) - 1:
            h = jnp.tanh(h)
    return h + x0


if __name__ == "__main__":
    # Small shapes consistent with GlobalPositionTransform usage in ModLaNet:
    # per-body generalized coords input_dim=2, hidden=32, global xy output_dim=2.
    # B=200 exercises the round-up-to-128 padding (single grid step, 56 pad cols).
    B, INPUT_DIM, HIDDEN_DIM, OUTPUT_DIM, NUM_LAYERS = 200, 2, 32, 2, 1

    key = jax.random.PRNGKey(0)
    key, kx, k0 = jax.random.split(key, 3)
    x = jax.random.normal(kx, (B, INPUT_DIM), jnp.float32)
    x0 = jax.random.normal(k0, (B, OUTPUT_DIM), jnp.float32)

    weights, biases = init_mlp_params(key, INPUT_DIM, HIDDEN_DIM,
                                      OUTPUT_DIM, NUM_LAYERS)

    y_ref = reference_forward(x, x0, weights, biases)

    # Default f32 path: exact module semantics.
    y = jax.block_until_ready(
        global_position_transform_forward(x, x0, weights, biases))
    assert y.shape == (B, OUTPUT_DIM)
    assert jnp.allclose(y, y_ref, atol=1e-5, rtol=1e-5), "f32 path mismatch"

    # bf16 activation path (the v6e/v7x recommendation): f32 accumulation,
    # bias/residual/store in f32, so only bf16 input/weight rounding remains.
    y_bf16 = jax.block_until_ready(
        global_position_transform_forward(x, x0, weights, biases,
                                          compute_dtype=jnp.bfloat16))
    assert jnp.allclose(y_bf16, y_ref, atol=1e-1, rtol=1e-1), "bf16 path mismatch"

    print("KERNEL_OK")
</pallas_src>

<mosaic_0001>
module attributes {stable_mosaic.version = 11 : i64} {
  func.func @_mlp_residual_kernel(%arg0: i32, %arg1: memref<4x256xf32, #tpu.memory_space<vmem>>, %arg2: memref<32x2xf32, #tpu.memory_space<vmem>>, %arg3: memref<32x1xf32, #tpu.memory_space<vmem>>, %arg4: memref<2x32xf32, #tpu.memory_space<vmem>>, %arg5: memref<2x1xf32, #tpu.memory_space<vmem>>, %arg6: memref<2x256xf32, #tpu.memory_space<vmem>>) attributes {dimension_semantics = [#tpu.dimension_semantics<parallel>], iteration_bounds = array<i64: 1>, scalar_prefetch = 0 : i64, scratch_operands = 0 : i64, tpu.core_type = #tpu.core_type<tc>, window_params = [{transform_indices = @transform_0, window_bounds = array<i64: 4, 256>}, {pipeline_mode = #tpu.pipeline_mode<synchronous>, transform_indices = @transform_1, window_bounds = array<i64: 32, 2>}, {pipeline_mode = #tpu.pipeline_mode<synchronous>, transform_indices = @transform_2, window_bounds = array<i64: 32, 1>}, {pipeline_mode = #tpu.pipeline_mode<synchronous>, transform_indices = @transform_3, window_bounds = array<i64: 2, 32>}, {pipeline_mode = #tpu.pipeline_mode<synchronous>, transform_indices = @transform_4, window_bounds = array<i64: 2, 1>}, {transform_indices = @transform_5, window_bounds = array<i64: 2, 256>}]} {
    %c0 = arith.constant 0 : index
    %c0_0 = arith.constant 0 : index
    %0 = vector.load %arg1[%c0, %c0_0] : memref<4x256xf32, #tpu.memory_space<vmem>>, vector<4x256xf32>
    %1 = vector.extract_strided_slice %0 {offsets = [0, 0], sizes = [2, 256], strides = [1, 1]} : vector<4x256xf32> to vector<2x256xf32>
    %2 = vector.extract_strided_slice %0 {offsets = [2, 0], sizes = [2, 256], strides = [1, 1]} : vector<4x256xf32> to vector<2x256xf32>
    %c0_1 = arith.constant 0 : index
    %c0_2 = arith.constant 0 : index
    %3 = vector.load %arg2[%c0_1, %c0_2] : memref<32x2xf32, #tpu.memory_space<vmem>>, vector<32x2xf32>
    %c0_3 = arith.constant 0 : index
    %c0_4 = arith.constant 0 : index
    %4 = vector.load %arg3[%c0_3, %c0_4] : memref<32x1xf32, #tpu.memory_space<vmem>>, vector<32x1xf32>
    %cst = arith.constant dense<0.000000e+00> : vector<32x256xf32>
    %5 = tpu.matmul %3, %1, %cst {dimension_numbers = #tpu.dot_dimension_numbers<[1], [0], [0], [1], [0, 0, 1, 1], [], []>} : vector<32x2xf32>, vector<2x256xf32>, vector<32x256xf32> -> vector<32x256xf32>
    %6 = vector.broadcast %4 : vector<32x1xf32> to vector<32x256xf32>
    %7 = arith.addf %5, %6 : vector<32x256xf32>
    %8 = math.tanh %7 : vector<32x256xf32>
    %c0_5 = arith.constant 0 : index
    %c0_6 = arith.constant 0 : index
    %9 = vector.load %arg4[%c0_5, %c0_6] : memref<2x32xf32, #tpu.memory_space<vmem>>, vector<2x32xf32>
    %c0_7 = arith.constant 0 : index
    %c0_8 = arith.constant 0 : index
    %10 = vector.load %arg5[%c0_7, %c0_8] : memref<2x1xf32, #tpu.memory_space<vmem>>, vector<2x1xf32>
    %cst_9 = arith.constant dense<0.000000e+00> : vector<2x256xf32>
    %11 = tpu.matmul %9, %8, %cst_9 {dimension_numbers = #tpu.dot_dimension_numbers<[1], [0], [0], [1], [0, 0, 1, 1], [], []>} : vector<2x32xf32>, vector<32x256xf32>, vector<2x256xf32> -> vector<2x256xf32>
    %12 = vector.broadcast %10 : vector<2x1xf32> to vector<2x256xf32>
    %13 = arith.addf %11, %12 : vector<2x256xf32>
    %14 = arith.addf %13, %2 : vector<2x256xf32>
    %c0_10 = arith.constant 0 : index
    %c0_11 = arith.constant 0 : index
    %15 = vector.load %arg6[%c0_10, %c0_11] : memref<2x256xf32, #tpu.memory_space<vmem>>, vector<2x256xf32>
    tpu.vector_store %arg6[%c0_10, %c0_11], %14 {strides = array<i32>} : memref<2x256xf32, #tpu.memory_space<vmem>>, vector<2x256xf32>,
    return
  }
  func.func @transform_0(%arg0: i32) -> (i32, i32) {
    %c0_i32 = arith.constant 0 : i32
    %c0_i32_0 = arith.constant 0 : i32
    return %c0_i32, %arg0 : i32, i32
  }
  func.func @transform_1(%arg0: i32) -> (i32, i32) {
    %c0_i32 = arith.constant 0 : i32
    %c0_i32_0 = arith.constant 0 : i32
    %c0_i32_1 = arith.constant 0 : i32
    return %c0_i32, %c0_i32_0 : i32, i32
  }
  func.func @transform_2(%arg0: i32) -> (i32, i32) {
    %c0_i32 = arith.constant 0 : i32
    %c0_i32_0 = arith.constant 0 : i32
    %c0_i32_1 = arith.constant 0 : i32
    return %c0_i32, %c0_i32_0 : i32, i32
  }
  func.func @transform_3(%arg0: i32) -> (i32, i32) {
    %c0_i32 = arith.constant 0 : i32
    %c0_i32_0 = arith.constant 0 : i32
    %c0_i32_1 = arith.constant 0 : i32
    return %c0_i32, %c0_i32_0 : i32, i32
  }
  func.func @transform_4(%arg0: i32) -> (i32, i32) {
    %c0_i32 = arith.constant 0 : i32
    %c0_i32_0 = arith.constant 0 : i32
    %c0_i32_1 = arith.constant 0 : i32
    return %c0_i32, %c0_i32_0 : i32, i32
  }
  func.func @transform_5(%arg0: i32) -> (i32, i32) {
    %c0_i32 = arith.constant 0 : i32
    %c0_i32_0 = arith.constant 0 : i32
    return %c0_i32, %arg0 : i32, i32
  }
}

</mosaic_0001>

<bundles_post_ra>
// kernel: global_position_transform_forward_feature_major.2
= control target key start
LH: loop header
LB: loop body
LE: loop exit
PB: predicated region body
PF: predicated region fallthrough
CT: control target
= control target key end

     0   :  { %s473_s0 = inlined_call_operand.vmem [shape: f32[32,2], index: 0, kind: input, shape index: {}]   ;;  %s474_s1 = inlined_call_operand.vmem [shape: f32[32,1], index: 1, kind: input, shape index: {}]   ;;  %s475_s2 = inlined_call_operand.vmem [shape: f32[2,32], index: 2, kind: input, shape index: {}]   ;;  %s476_s3 = inlined_call_operand.vmem [shape: f32[2,1], index: 3, kind: input, shape index: {}]   ;;  %s477_s4 = inlined_call_operand.vmem [shape: f32[4,200], index: 4, kind: input, shape index: {}]   ;;  %s478_s5 = inlined_call_operand.<no memory space> [shape: f32[], index: 5, kind: input, shape index: {}]   ;;  %s479_s6 = inlined_call_operand.hbm [shape: f32[2,256], index: 6, kind: output, shape index: {}]  }
   0x1   :  { %v11_v0 = vstv %s478_s5 }
   0x2   :  { %v24_v1 = vlaneseq  ;;  %v23_v2 = vld [vmem:[%s477_s4] sm:$0xf]  ;;  %v374_v3 = vmov 0.0   ;;  %v311_v5 = vld [vmem:[%s477_s4 + $0x4] sm:$0xf]  ;;  %v375_v7 = vmov 0  }
   0x3   :  { %164 = vmatprep.mubr.f32.mxu0 %v374_v3  ;;  %272 = vmatprep.mubr.f32.mxu1 %v374_v3  ;;  %v56_v8 = vld [vmem:[%s474_s1] sm:$0xff]  ;;  %v58_v9 = vld [vmem:[%s474_s1 + $0x10] sm:$0xff]  ;;  %v57_v11 = vld [vmem:[%s474_s1 + $0x8] sm:$0xff] }
   0x4   :  { %v25_v4 = vshrl.u32 %v24_v1, 7  ;;  %v44_v6 = vand.u32 127, %v24_v1  ;;  %331 = vset.pattern.permute.xlu0 %v375_v7  ;;  %332 = vset.pattern.permute.xlu1 %v375_v7 }
   0x5   :  { %62 = vperm.xlu0 %331, %v56_v8   ;;  %72 = vperm.xlu1 %332, %v58_v9  }
   0x6   :  { %vm27_vm0 = vcmp.lt.s32.totalorder %v25_v4, 4  ;;  %v45_v10 = vadd.s32 128, %v44_v6 }
   0x7   :  { %12 = vsyncpa [#allocation8], 0  ;;  %v28_v12 = vsel %vm27_vm0, %v23_v2, %v11_v0  ;;  %v42_v13 = vsel %vm27_vm0, %v311_v5, %v11_v0  ;;  %v59_v14 = vld [vmem:[%s474_s1 + $0x18] sm:$0xff]  ;;  %v198_v16 = vld [vmem:[%s476_s3] sm:$0x3]  ;;  %vm95_vm2 = vcmask 1041408  }
   0x8   :  { %35 = vst [vmem:[#allocation9] sm:$0xf] %v28_v12  ;;  %vm46_vm1 = vcmp.lt.s32.totalorder %v45_v10, 200  ;;  %v52_v19 = vld [vmem:[%s473_s0] sm:$0xff]  ;;  %vm82_vm3 = vcmask 15360   ;;  %v53_v20 = vld [vmem:[%s473_s0 + $0x8] sm:$0xff] }
   0x9   :  { %v47_v15 = vsel %vm46_vm1, %v42_v13, %v11_v0  ;;  %67 = vperm.xlu0 %331, %v57_v11   ;;  %77 = vperm.xlu1 %332, %v59_v14   ;;  %v54_v21 = vld [vmem:[%s473_s0 + $0x10] sm:$0xff]  ;;  %v55_v22 = vld [vmem:[%s473_s0 + $0x18] sm:$0xff]  ;;  %v197_v55 = vld [vmem:[%s475_s2] sm:$0x3]  ;;  %vm204_vm4 = vcmask 261120   ;;  %s376_s18 = smov [#allocation7]  }
   0xa   :  { %50 = vst [vmem:[#allocation9 + $0x4] sm:$0xf] %v47_v15  ;;  %s303_s19 = sshll.u32 %s376_s18, 4  ;;  %s304_s19 = int_to_ptr.vmem [resolvable:$true] %s303_s19 }
   0xb   :  { %s350_s20 = scalar_lea.vmem %s304_s19, 64  ;;  %p355_p1 = scmp.lt.s32.totalorder %s304_s19, %s304_s19 }
   0xc   :  { %p351_p0 = scmp.ne.s32.totalorder %s304_s19, %s350_s20  ;;  %p356_p2 = scmp.lt.s32.totalorder %s350_s20, %s350_s20 }
   0xd   :  { %201 = vperm.xlu0 %331, %v198_v16  }
   0xe   :  { %p357_p3 = por %p356_p2, %p355_p1 }
  0x10   :  { %p358_p4 = pnand %p357_p3, %p351_p0 }
  0x11   :  { %v436_v17 = vld [vmem:[#allocation9] sm:$0xff] }
  0x12   :  { %v440_v18 = vcombine.high %v436_v17, %v436_v17  ;;  %v279_v56 = vrot.slane %v436_v17, 2 }
  0x14   :  { %312 = vmatprep.subr.msk.mxu0 %vm95_vm2, %v440_v18  ;;  %v280_v57 = vrot.slane %v440_v18, 2 }
  0x15   :  { %313 = vmatpush1.msk.msra.mxu0 %vm95_vm2, %v436_v17 }
  0x16   :  { %314 = vmatmul.mubr.msk.f32.vlgmr.msra.gmra.mrb[0].mxu0 %vm82_vm3, %v52_v19 }
  0x17   :  { %170 = vmatprep.mubr.f32.mxu0 %v374_v3 }
  0x1a   :  { %315 = vmatmul.mubr.msk.f32.gmra.mrb[2].mxu0 %vm82_vm3, %v53_v20 }
  0x1b   :  { %176 = vmatprep.mubr.f32.mxu0 %v374_v3 }
  0x1e   :  { %316 = vmatmul.mubr.msk.f32.gmra.mrb[4].mxu0 %vm82_vm3, %v54_v21 }
  0x1f   :  { %182 = vmatprep.mubr.f32.mxu0 %v374_v3 }
  0x22   :  { %317 = vmatmul.mubr.msk.f32.gmra.mrb[6].mxu0 %vm82_vm3, %v55_v22 }
  0x84   :  { %v63_v23 = vpop.permute.xlu0 %62  ;;  %v73_v32 = vpop.permute.xlu1 %72 }
  0x88   :  { %v68_v28 = vpop.permute.xlu0 %67  ;;  %v78_v38 = vpop.permute.xlu1 %77 }
  0x8c   :  { %v202_v58 = vpop.permute.xlu0 %201 }
  0xe9   :  { %v166_v24 = vpop.f32.mrb[0].mxu0 }
  0xea   :  { %v167_v25 = vadd.f32 %v166_v24, %v63_v23  ;;  %v168_v26 = vpop.f32.mrb[1].mxu0 }
  0xeb   :  { %v169_v27 = vadd.f32 %v168_v26, %v63_v23 }
  0xec   :  { %334 = vtanh.f32 %v167_v25 }
  0xed   :  { %v172_v29 = vpop.f32.mrb[2].mxu0  ;;  %336 = vtanh.f32 %v169_v27 }
  0xee   :  { %v173_v30 = vadd.f32 %v172_v29, %v68_v28  ;;  %v174_v31 = vpop.f32.mrb[3].mxu0 }
  0xef   :  { %v175_v33 = vadd.f32 %v174_v31, %v68_v28 }
  0xf0   :  { %338 = vtanh.f32 %v173_v30 }
  0xf1   :  { %340 = vtanh.f32 %v175_v33  ;;  %v178_v34 = vpop.f32.mrb[4].mxu0 }
  0xf2   :  { %v179_v35 = vadd.f32 %v178_v34, %v73_v32  ;;  %v180_v36 = vpop.f32.mrb[5].mxu0 }
  0xf3   :  { %v181_v37 = vadd.f32 %v180_v36, %v73_v32 }
  0xf4   :  { %342 = vtanh.f32 %v179_v35 }
  0xf5   :  { %v184_v39 = vpop.f32.mrb[6].mxu0  ;;  %344 = vtanh.f32 %v181_v37 }
  0xf6   :  { %v185_v40 = vadd.f32 %v184_v39, %v78_v38  ;;  %v186_v41 = vpop.f32.mrb[7].mxu0  ;;  %v335_v43 = vpop.eup %334 }
  0xf7   :  { %v187_v42 = vadd.f32 %v186_v41, %v78_v38  ;;  %v337_v44 = vpop.eup %336 }
  0xf8   :  { %346 = vtanh.f32 %v185_v40 }
  0xf9   :  { %348 = vtanh.f32 %v187_v42 }
  0xfa   :  { %v339_v45 = vpop.eup %338 }
  0xfb   :  { %v341_v46 = vpop.eup %340  ;;  %v322_v47 = vpack.c.bf16 %v339_v45, %v335_v43 }
  0xfc   :  { %v320_v48 = vpack.c.bf16 %v341_v46, %v337_v44 }
  0xfe   :  { %321 = vmatprep.subr.bf16.mxu1 %v320_v48  ;;  %v343_v49 = vpop.eup %342 }
  0xff   :  { %323 = vmatpush1.bf16.msra.mxu1 %v322_v47  ;;  %v345_v50 = vpop.eup %344 }
 0x102   :  { %v347_v51 = vpop.eup %346 }
 0x103   :  { %v349_v52 = vpop.eup %348  ;;  %v326_v53 = vpack.c.bf16 %v347_v51, %v343_v49 }
 0x104   :  { %v324_v54 = vpack.c.bf16 %v349_v52, %v345_v50 }
 0x106   :  { %325 = vmatprep.subr.bf16.mxu1 %v324_v54 }
 0x107   :  { %327 = vmatpush1.bf16.msra.mxu1 %v326_v53 }
 0x10a   :  { %318 = vmatmul.mubr.msk.f32.vlgmr.msra.gmra.mrb[0].mxu1 %vm204_vm4, %v197_v55 }
 0x1dd   :  { %v274_v59 = vpop.f32.mrb[0].mxu1 }
 0x1de   :  { %v275_v60 = vadd.f32 %v274_v59, %v202_v58  ;;  %v276_v61 = vpop.f32.mrb[1].mxu1 }
 0x1df   :  { %v277_v62 = vadd.f32 %v276_v61, %v202_v58 }
 0x1e0   :  { %v283_v63 = vadd.f32 %v279_v56, %v275_v60 }
 0x1e1   :  { %v284_v0 = vadd.f32 %v280_v57, %v277_v62 }
 0x1e3   :  { %v287_v1 = vcombine.low %v283_v63, %v284_v0 }
 0x1e5   :  { %319 = vst.sshfl [vmem:[#allocation7] sm:$0x33 pattern:$0x76325410] %v287_v1 }
 0x1e6   :  { %361 = shalt.err (!%p358_p4)
}
 0x1e7   :  { %s362_s22 = scalar_lea.hbm %s479_s6, 64 }
 0x1e8   :  { %p363_p5 = scmp.ne.s32.totalorder %s479_s6, %s362_s22  ;;  %p366_p6 = scmp.lt.u32.totalorder %s362_s22, %s479_s6 }
 0x1ea   :  { %p368_p7 = pnand %p366_p6, %p363_p5 }
 0x1ec   :  { %371 = shalt.err (!%p368_p7)
}
 0x1ed   :  { %306 = dma.vmem_to_hbm [thread:$0]  %s304_s19, 64, %s479_s6, [#allocation8]  }
 0x1ee   :  { %372 = dma.done.wait [#allocation8], 64  }
 0x1ef   :  { %373 = vsyncadd [#allocation8], 4294967232 }
 0x1f0   :  { %310 = vsyncpa [#allocation8], 1 }

</bundles_post_ra>
